<compile_context>
chip_gen: v6e
topology: v6e:2x2x1
jax: 0.10.0
libtpu: 0.0.40
codegen_flags: <defaults>
</compile_context>

<pallas_src>
import functools

import jax
import jax.numpy as jnp
from jax.experimental import pallas as pl
from jax.experimental.pallas import tpu as pltpu


# ---------------------------------------------------------------------------
# Kernel
# ---------------------------------------------------------------------------
def _gnll_kernel(params_ref, recon_ref, target_ref, out_ref, *,
                 bin_target: bool, hard_targets: bool):
    # params (SMEM): [gamma, inv_std, post_scale, post_const]
    k = pl.program_id(1)

    @pl.when(k == 0)
    def _init():
        out_ref[...] = jnp.zeros_like(out_ref)

    if bin_target:
        r = recon_ref[...].astype(jnp.float32)
        t = target_ref[...].astype(jnp.float32)
        gamma = params_ref[0]
        inv_std = params_ref[1]
        z = (gamma - r) * inv_std               # scalar mul, not per-elem divide
        e = jax.lax.erf(z)                      # EUP
        p = 0.5 - 0.5 * e                       # ber_prob = 1 - (1 + erf(z)) / 2
        if hard_targets:
            # Targets are exactly {0,1}: one log + a select instead of two logs.
            elem = -jnp.log(jnp.where(t > 0.5, p, 1.0 - p) + 1e-15)
        else:
            log_p = jnp.log(p + 1e-15)
            log_q = jnp.log(1.0 - p + 1e-15)
            # -t*log_p - (1-t)*log_q == -(t*(log_p - log_q) + log_q)
            elem = -(t * (log_p - log_q) + log_q)
    else:
        # Diff at native dtype (bf16 VALU on v6e/v7x), widen only for the square.
        d = target_ref[...] - recon_ref[...]
        d32 = d.astype(jnp.float32)
        elem = d32 * d32

    row_sum = jnp.sum(elem, axis=1)             # (TB,)  -> lane-dense
    out_ref[...] += row_sum[None, :]            # accumulate into resident (1, TB)

    @pl.when(k == pl.num_programs(1) - 1)
    def _finalize():
        out_ref[...] = params_ref[2] * out_ref[...] + params_ref[3]


# ---------------------------------------------------------------------------
# Tiling heuristics
# ---------------------------------------------------------------------------
def _vmem_capacity_bytes():
    try:
        info = pltpu.get_tpu_info()
        cap = getattr(info, "vmem_capacity_bytes", None)
        if cap:
            return int(cap)
    except Exception:
        pass
    return 64 * 1024 * 1024          # conservative default (v7x-sized VMEM)


def _choose_tiles(B, D, itemsize, bin_target, vmem_cap_bytes):
    """Pick (batch_tile, feature_tile) from the f32 working set, not raw itemsize."""
    # f32 temporaries live per element inside the body (casts, z/e, p, logs, elem).
    n_f32_tmp = 5 if bin_target else 2
    # 2 inputs x 2 pipeline buffers at native dtype + f32 temporaries.
    bytes_per_elem = 4 * itemsize + 4 * n_f32_tmp

    budget = int(vmem_cap_bytes * 0.45)          # working-set budget, with headroom

    # --- feature (lane) tile: only tile D when a 128-row tile can't fit ---
    min_rows = min(B, 128)
    td = D
    if D * bytes_per_elem * min_rows > budget and D % 128 == 0:
        cand = max(128, (budget // (bytes_per_elem * min_rows)) // 128 * 128)
        td = None
        while cand >= 128:
            if D % cand == 0:
                td = cand
                break
            cand -= 128
        if td is None:
            # TODO(synk): mask padded feature columns to allow D-tiling when
            # D has no multiple-of-128 divisor; fall back to full D.
            td = D

    # --- batch (row) tile ---
    tb = budget // max(1, td * bytes_per_elem)
    if tb >= B:
        tb = B
        if B >= 256:
            # Ensure >=2 grid steps so the "parallel" axis can use both v7x cores.
            tb = max(128, (B // 2) // 128 * 128)
    else:
        # Multiple of 128 keeps the lane-dense (1, TB) output block legal and
        # covers bf16/int8 sublane packing.
        tb = max(128, (tb // 128) * 128)
        if tb >= B:
            tb = B
    return int(tb), int(td)


# ---------------------------------------------------------------------------
# Wrapper
# ---------------------------------------------------------------------------
def gaussian_negative_likelihood(reconstruction, target, bin_target, *,
                                 var=1.0, gamma=0.0, dim_sum=1, weight=1.0,
                                 hard_targets=False):
    """Pallas-backed forward pass of GaussianNegativeLikelihood."""
    B, D = reconstruction.shape
    bin_target = bool(bin_target)
    hard_targets = bool(hard_targets)

    var_a = jnp.float32(var)
    gamma_a = jnp.float32(gamma)
    weight_a = jnp.float32(weight)
    inv_std = jax.lax.rsqrt(2.0 * var_a)

    if bin_target:
        post_scale = weight_a / jnp.float32(D)
        post_const = jnp.float32(0.0)
    else:
        post_scale = weight_a / (2.0 * jnp.float32(dim_sum) * var_a * jnp.float32(D))
        post_const = weight_a * jnp.log(jnp.float32(dim_sum) * var_a + 1e-15) / 2.0

    params = jnp.stack([gamma_a, inv_std, post_scale, post_const]).astype(jnp.float32)

    itemsize = max(reconstruction.dtype.itemsize, target.dtype.itemsize)
    vmem_cap = _vmem_capacity_bytes()
    tb, td = _choose_tiles(B, D, itemsize, bin_target, vmem_cap)

    nb = pl.cdiv(B, tb)
    nd = pl.cdiv(D, td)
    b_pad = nb * tb

    kernel = functools.partial(_gnll_kernel, bin_target=bin_target,
                               hard_targets=hard_targets)

    flops_per_elem = 12 if bin_target else 3
    transc_per_elem = (2 if hard_targets else 3) if bin_target else 0
    cost = pl.CostEstimate(
        flops=flops_per_elem * B * D,
        transcendentals=transc_per_elem * B * D,
        bytes_accessed=2 * B * D * itemsize + 4 * B,
    )

    vmem_limit = min(int(vmem_cap * 0.70), 100 * 1024 * 1024)

    out = pl.pallas_call(
        kernel,
        out_shape=jax.ShapeDtypeStruct((1, b_pad), jnp.float32),
        grid_spec=pltpu.PrefetchScalarGridSpec(
            num_scalar_prefetch=1,
            grid=(nb, nd),
            in_specs=[
                pl.BlockSpec((tb, td), lambda i, k, params: (i, k)),   # reconstruction
                pl.BlockSpec((tb, td), lambda i, k, params: (i, k)),   # target
            ],
            # Lane-dense output: one (1, TB) row per batch tile, resident across k.
            out_specs=pl.BlockSpec((1, tb), lambda i, k, params: (0, i)),
        ),
        compiler_params=pltpu.CompilerParams(
            dimension_semantics=("parallel", "arbitrary"),
            vmem_limit_bytes=vmem_limit,
        ),
        cost_estimate=cost,
    )(params, reconstruction, target)

    return out[0, :B]          # (B,) == weight * nll_loss.mean(dim=1)


# ---------------------------------------------------------------------------
# Pure-JAX reference (mirrors the PyTorch module)
# ---------------------------------------------------------------------------
def _reference(reconstruction, target, bin_target,
               *, var=1.0, gamma=0.0, dim_sum=1, weight=1.0):
    r = reconstruction.astype(jnp.float32)
    t = target.astype(jnp.float32)
    if bin_target:
        ber_prob = 1.0 - (1.0 + jax.lax.erf((gamma - r) /
                                            jnp.sqrt(2.0 * var))) / 2.0
        nll = (-t * jnp.log(ber_prob + 1e-15)
               - (1.0 - t) * jnp.log(1.0 - ber_prob + 1e-15))
    else:
        nll = ((t - r) ** 2 / (2.0 * dim_sum * var)
               + jnp.log(dim_sum * var + 1e-15) / 2.0)
    return weight * jnp.mean(nll, axis=1)


if __name__ == "__main__":
    key = jax.random.PRNGKey(0)
    k1, k2, k3 = jax.random.split(key, 3)

    B, D = 8, 256
    dim_sum = D          # constructor arg dim_sum
    var = 1.0            # constructor default
    gamma = 0.0          # constructor default
    weight = 1.0         # constructor default

    reconstruction = jax.random.normal(k1, (B, D), dtype=jnp.float32)
    target_cont = jax.random.normal(k2, (B, D), dtype=jnp.float32)
    target_bin = (jax.random.uniform(k3, (B, D)) > 0.5).astype(jnp.float32)

    # Gaussian branch (bin_target=False)
    out_gauss = gaussian_negative_likelihood(
        reconstruction, target_cont, False,
        var=var, gamma=gamma, dim_sum=dim_sum, weight=weight)
    jax.block_until_ready(out_gauss)
    ref_gauss = _reference(reconstruction, target_cont, False,
                           var=var, gamma=gamma, dim_sum=dim_sum, weight=weight)

    # Bernoulli / erf branch, soft-target path (bin_target=True)
    out_bin = gaussian_negative_likelihood(
        reconstruction, target_bin, True,
        var=var, gamma=gamma, dim_sum=dim_sum, weight=weight)
    jax.block_until_ready(out_bin)
    ref_bin = _reference(reconstruction, target_bin, True,
                         var=var, gamma=gamma, dim_sum=dim_sum, weight=weight)

    # Bernoulli / erf branch, hard-target fast path (targets are exactly {0,1})
    out_bin_hard = gaussian_negative_likelihood(
        reconstruction, target_bin, True,
        var=var, gamma=gamma, dim_sum=dim_sum, weight=weight, hard_targets=True)
    jax.block_until_ready(out_bin_hard)

    assert out_gauss.shape == (B,)
    assert out_bin.shape == (B,)
    assert out_bin_hard.shape == (B,)
    assert jnp.allclose(out_gauss, ref_gauss, rtol=1e-5, atol=1e-5)
    assert jnp.allclose(out_bin, ref_bin, rtol=1e-5, atol=1e-5)
    assert jnp.allclose(out_bin_hard, ref_bin, rtol=1e-5, atol=1e-5)

    print("KERNEL_OK")
</pallas_src>

<mosaic_0001>
module attributes {stable_mosaic.version = 11 : i64} {
  func.func @_gnll_kernel(%arg0: i32, %arg1: i32, %arg2: memref<4xf32, #tpu.memory_space<smem>>, %arg3: memref<8x256xf32, #tpu.memory_space<vmem>>, %arg4: memref<8x256xf32, #tpu.memory_space<vmem>>, %arg5: memref<1x8xf32, #tpu.memory_space<vmem>>) attributes {dimension_semantics = [#tpu.dimension_semantics<parallel>, #tpu.dimension_semantics<arbitrary>], iteration_bounds = array<i64: 1, 1>, scalar_prefetch = 1 : i64, scratch_operands = 0 : i64, tpu.core_type = #tpu.core_type<tc>, window_params = [{transform_indices = @transform_0, window_bounds = array<i64: 8, 256>}, {transform_indices = @transform_1, window_bounds = array<i64: 8, 256>}, {transform_indices = @transform_2, window_bounds = array<i64: 1, 8>}]} {
    %c0_i32 = arith.constant 0 : i32
    %0 = arith.cmpi eq, %arg1, %c0_i32 : i32
    %1 = arith.extui %0 : i1 to i32
    %c0_i32_0 = arith.constant 0 : i32
    %2 = arith.cmpi ne, %1, %c0_i32_0 : i32
    scf.if %2 {
      %cst_10 = arith.constant 0.000000e+00 : f32
      %15 = vector.broadcast %cst_10 : f32 to vector<1x8xf32>
      %c0_11 = arith.constant 0 : index
      %c0_12 = arith.constant 0 : index
      %16 = vector.load %arg5[%c0_11, %c0_12] : memref<1x8xf32, #tpu.memory_space<vmem>>, vector<1x8xf32>
      tpu.vector_store %arg5[%c0_11, %c0_12], %15 {strides = array<i32>} : memref<1x8xf32, #tpu.memory_space<vmem>>, vector<1x8xf32>,
    } else {
    }
    %c0 = arith.constant 0 : index
    %c0_1 = arith.constant 0 : index
    %3 = vector.load %arg4[%c0, %c0_1] : memref<8x256xf32, #tpu.memory_space<vmem>>, vector<8x256xf32>
    %c0_2 = arith.constant 0 : index
    %c0_3 = arith.constant 0 : index
    %4 = vector.load %arg3[%c0_2, %c0_3] : memref<8x256xf32, #tpu.memory_space<vmem>>, vector<8x256xf32>
    %5 = arith.subf %3, %4 : vector<8x256xf32>
    %6 = arith.mulf %5, %5 : vector<8x256xf32>
    %cst = arith.constant dense<0.000000e+00> : vector<8xf32>
    %7 = vector.multi_reduction <add>, %6, %cst [1] : vector<8x256xf32> to vector<8xf32>
    %c0_4 = arith.constant 0 : index
    %c0_5 = arith.constant 0 : index
    %8 = vector.load %arg5[%c0_4, %c0_5] : memref<1x8xf32, #tpu.memory_space<vmem>>, vector<1x8xf32>
    %9 = vector.shape_cast %7 : vector<8xf32> to vector<1x8xf32>
    %10 = arith.addf %8, %9 : vector<1x8xf32>
    %c0_6 = arith.constant 0 : index
    %c0_7 = arith.constant 0 : index
    %11 = vector.load %arg5[%c0_6, %c0_7] : memref<1x8xf32, #tpu.memory_space<vmem>>, vector<1x8xf32>
    tpu.vector_store %arg5[%c0_6, %c0_7], %10 {strides = array<i32>} : memref<1x8xf32, #tpu.memory_space<vmem>>, vector<1x8xf32>,
    %c0_i32_8 = arith.constant 0 : i32
    %12 = arith.cmpi eq, %arg1, %c0_i32_8 : i32
    %13 = arith.extui %12 : i1 to i32
    %c0_i32_9 = arith.constant 0 : i32
    %14 = arith.cmpi ne, %13, %c0_i32_9 : i32
    scf.if %14 {
      %c2 = arith.constant 2 : index
      %15 = memref.load %arg2[%c2] : memref<4xf32, #tpu.memory_space<smem>>
      %c0_10 = arith.constant 0 : index
      %c0_11 = arith.constant 0 : index
      %16 = vector.load %arg5[%c0_10, %c0_11] : memref<1x8xf32, #tpu.memory_space<vmem>>, vector<1x8xf32>
      %17 = vector.broadcast %15 : f32 to vector<1x8xf32>
      %18 = arith.mulf %17, %16 : vector<1x8xf32>
      %c3 = arith.constant 3 : index
      %19 = memref.load %arg2[%c3] : memref<4xf32, #tpu.memory_space<smem>>
      %20 = vector.broadcast %19 : f32 to vector<1x8xf32>
      %21 = arith.addf %18, %20 : vector<1x8xf32>
      %c0_12 = arith.constant 0 : index
      %c0_13 = arith.constant 0 : index
      %22 = vector.load %arg5[%c0_12, %c0_13] : memref<1x8xf32, #tpu.memory_space<vmem>>, vector<1x8xf32>
      tpu.vector_store %arg5[%c0_12, %c0_13], %21 {strides = array<i32>} : memref<1x8xf32, #tpu.memory_space<vmem>>, vector<1x8xf32>,
    } else {
    }
    return
  }
  func.func @transform_0(%arg0: i32, %arg1: i32, %arg2: memref<4xf32, #tpu.memory_space<smem>>) -> (i32, i32) {
    %c0_i32 = arith.constant 0 : i32
    return %arg0, %arg1 : i32, i32
  }
  func.func @transform_1(%arg0: i32, %arg1: i32, %arg2: memref<4xf32, #tpu.memory_space<smem>>) -> (i32, i32) {
    %c0_i32 = arith.constant 0 : i32
    return %arg0, %arg1 : i32, i32
  }
  func.func @transform_2(%arg0: i32, %arg1: i32, %arg2: memref<4xf32, #tpu.memory_space<smem>>) -> (i32, i32) {
    %c0_i32 = arith.constant 0 : i32
    %c0_i32_0 = arith.constant 0 : i32
    return %c0_i32, %arg0 : i32, i32
  }
}

</mosaic_0001>

<bundles_post_ra>
// kernel: tpu_custom_call.1
= control target key start
LH: loop header
LB: loop body
LE: loop exit
PB: predicated region body
PF: predicated region fallthrough
CT: control target
= control target key end

     0   :  { %s281_s12 = smov [#allocation3]   ;;  %s323_s0 = inlined_call_operand.hbm [shape: f32[4], index: 0, kind: input, shape index: {}]   ;;  %s324_s1 = inlined_call_operand.hbm [shape: f32[8,256], index: 1, kind: input, shape index: {}]   ;;  %s325_s2 = inlined_call_operand.hbm [shape: f32[8,256], index: 2, kind: input, shape index: {}]   ;;  %s326_s3 = inlined_call_operand.hbm [shape: f32[1,8], index: 3, kind: output, shape index: {}]  }
   0x1   :  { %9 = dma.hbm_to_smem %s323_s0, 16, %s281_s12, [#allocation2] }
   0x2   :  { %273 = dma.done.wait [#allocation2], 16 }
   0x3   :  { %274 = vsyncadd [#allocation2], 4294967280 }
   0x4   :  { %11 = sfence }
   0x5   :  { %12 = vsyncpa [#allocation5], 0 }
   0x6   :  { %13 = vsyncpa [#allocation8], 0 }
   0x7   :  { %14 = vsyncpa [#allocation6], 0  ;;  %s282_s15 = smov [#allocation4]   ;;  %s283_s17 = smov [#allocation7]  }
   0x8   :  { %s21_s16 = sshll.u32 %s282_s15, 4  ;;  %s31_s18 = sshll.u32 %s283_s17, 4  ;;  %s22_s16 = int_to_ptr.vmem [resolvable:$true] %s21_s16  ;;  %s32_s18 = int_to_ptr.vmem [resolvable:$true] %s31_s18 }
   0x9   :  { %s221_s19 = scalar_lea.vmem %s22_s16, 256  ;;  %p226_p1 = scmp.lt.s32.totalorder %s22_s16, %s22_s16 }
   0xa   :  { %p222_p0 = scmp.ne.s32.totalorder %s22_s16, %s221_s19  ;;  %p227_p2 = scmp.lt.s32.totalorder %s221_s19, %s221_s19 }
   0xc   :  { %p228_p3 = por %p227_p2, %p226_p1 }
   0xe   :  { %p229_p4 = pnand %p228_p3, %p222_p0 }
  0x10   :  { %232 = shalt.err (!%p229_p4)
}
  0x11   :  { %24 = dma.hbm_to_vmem [thread:$0]  %s324_s1, 256, %s22_s16, [#allocation5]  }
  0x12   :  { %s241_s21 = scalar_lea.vmem %s32_s18, 256  ;;  %p246_p6 = scmp.lt.s32.totalorder %s32_s18, %s32_s18 }
  0x13   :  { %p242_p5 = scmp.ne.s32.totalorder %s32_s18, %s241_s21  ;;  %p247_p7 = scmp.lt.s32.totalorder %s241_s21, %s241_s21 }
  0x15   :  { %p248_p8 = por %p247_p7, %p246_p6 }
  0x17   :  { %p249_p9 = pnand %p248_p8, %p242_p5 }
  0x19   :  { %252 = shalt.err (!%p249_p9)
}
  0x1a   :  { %34 = dma.hbm_to_vmem [thread:$0]  %s325_s2, 256, %s32_s18, [#allocation8]  }
  0x1b   :  { %275 = dma.done.wait [#allocation5], 256  }
  0x1c   :  { %276 = vsyncadd [#allocation5], 4294967040 }
  0x1d   :  { %277 = dma.done.wait [#allocation8], 256  }
  0x1e   :  { %278 = vsyncadd [#allocation8], 4294967040  ;;  %v47_v0 = vld [vmem:[#allocation7] sm:$0xff]  ;;  %v48_v1 = vld [vmem:[#allocation7 + $0x8] sm:$0xff]  ;;  %v284_v9 = vmov 0   ;;  %v60_v10 = vlaneseq  ;;  %vm45_vm0 = vcmask 57344  }
  0x1f   :  { %v49_v2 = vld [vmem:[#allocation4] sm:$0xff]  ;;  %v50_v3 = vld [vmem:[#allocation4 + $0x8] sm:$0xff]  ;;  %204 = vset.pattern.permute.xlu0 %v284_v9  ;;  %v285_v13 = vmov 0.0   ;;  %v286_v15 = vmov 1966171168   ;;  %s195_s1 = sld [smem:[#allocation3 + $0x2]] }
  0x20   :  { %v51_v4 = vsub.f32 %v47_v0, %v49_v2  ;;  %v52_v5 = vsub.f32 %v48_v1, %v50_v3  ;;  %v61_v11 = vshrl.u32 %v60_v10, 7  ;;  %v145_v12 = vand.u32 127, %v60_v10  ;;  %46 = vst.msk [vmem:[#allocation9] sm:$0x1] %vm45_vm0, %v285_v13  ;;  %s196_s2 = sld [smem:[#allocation3 + $0x3]]  ;;  %s287_s24 = smov [#allocation9]  }
  0x21   :  { %v97_v16 = vunpack.c.l.s4 %v286_v15  ;;  %s185_s25 = sshll.u32 %s287_s24, 4  ;;  %s186_s25 = int_to_ptr.vmem [resolvable:$true] %s185_s25 }
  0x22   :  { %v53_v6 = vmul.f32 %v51_v4, %v51_v4  ;;  %v54_v7 = vmul.f32 %v52_v5, %v52_v5  ;;  %v148_v14 = vsub.s32 %v145_v12, %v61_v11  ;;  %v62_v18 = vsub.s32 0, %v61_v11  ;;  %s253_s26 = scalar_lea.vmem %s186_s25, 16  ;;  %s257_s27 = scalar_lea.vmem %s186_s25, 32 }
  0x23   :  { %v98_v17 = vunpack.c.0.s8 %v97_v16  ;;  %v66_v19 = vsub.s32 1, %v61_v11  ;;  %v70_v20 = vsub.s32 2, %v61_v11  ;;  %v74_v21 = vsub.s32 3, %v61_v11  ;;  %p254_p10 = scmp.ne.s32.totalorder %s186_s25, %s253_s26  ;;  %p258_p11 = scmp.lt.s32.totalorder %s186_s25, %s186_s25 }
  0x24   :  { %v55_v8 = vadd.f32 %v54_v7, %v53_v6  ;;  %v78_v22 = vsub.s32 4, %v61_v11  ;;  %v82_v23 = vsub.s32 5, %v61_v11  ;;  %v86_v24 = vsub.s32 6, %v61_v11  ;;  %p259_p12 = scmp.lt.s32.totalorder %s257_s27, %s253_s26 }
  0x25   :  { %v90_v25 = vsub.s32 7, %v61_v11  ;;  %v101_v27 = vsub.s32 %v98_v17, %v61_v11  ;;  %v173_v55 = vstv %s195_s1 }
  0x26   :  { %56 = vadd.xlane.f32.xlu0 %v55_v8  ;;  %v176_v57 = vstv %s196_s2  ;;  %p260_p13 = por %p259_p12, %p258_p11 }
  0x27   :  { %v58_v52 = vld [vmem:[#allocation9] sm:$0x1] }
  0x28   :  { %p261_p0 = pnand %p260_p13, %p254_p10 }
  0xaf   :  { %v57_v26 = vpop.xlane.xlu0 %56 }
  0xb0   :  { %v63_v28 = vrot.slane %v57_v26, %v62_v18  ;;  %v67_v29 = vrot.slane %v57_v26, %v66_v19  ;;  %v71_v30 = vrot.slane %v57_v26, %v70_v20  ;;  %v75_v31 = vrot.slane %v57_v26, %v74_v21 }
  0xb1   :  { %v79_v32 = vrot.slane %v57_v26, %v78_v22  ;;  %v83_v33 = vrot.slane %v57_v26, %v82_v23  ;;  %v87_v34 = vrot.slane %v57_v26, %v86_v24  ;;  %v91_v35 = vrot.slane %v57_v26, %v90_v25 }
  0xb2   :  { %v92_v36 = vcombine.low %v63_v28, %v67_v29  ;;  %v93_v37 = vcombine.low %v71_v30, %v75_v31 }
  0xb3   :  { %v94_v38 = vcombine.low %v79_v32, %v83_v33  ;;  %v95_v39 = vcombine.low %v87_v34, %v91_v35 }
  0xb4   :  { %v102_v40 = vrot.slane %v92_v36, %v101_v27  ;;  %v109_v41 = vrot.slane %v93_v37, %v101_v27 }
  0xb5   :  { %v116_v42 = vrot.slane %v94_v38, %v101_v27  ;;  %v123_v43 = vrot.slane %v95_v39, %v101_v27 }
  0xb6   :  { %v124_v44 = vcombine.low %v102_v40, %v109_v41 }
  0xb7   :  { %v125_v45 = vcombine.low %v116_v42, %v123_v43 }
  0xb8   :  { %v132_v46 = vrot.slane %v124_v44, %v101_v27 }
  0xb9   :  { %v139_v47 = vrot.slane %v125_v45, %v101_v27 }
  0xbb   :  { %v140_v48 = vcombine.low %v132_v46, %v139_v47 }
  0xbd   :  { %142 = vperm.xlu0 %204, %v140_v48  }
 0x138   :  { %v143_v49 = vpop.permute.xlu0 %142 }
 0x139   :  { %v149_v50 = vrot.slane %v143_v49, %v148_v14 }
 0x13b   :  { %v156_v51 = vrot.slane %v149_v50, %v101_v27 }
 0x13d   :  { %v163_v53 = vrot.slane %v156_v51, %v101_v27 }
 0x13f   :  { %v165_v54 = vadd.f32 %v163_v53, %v58_v52 }
 0x141   :  { %167 = vst.msk [vmem:[#allocation9] sm:$0x1] %vm45_vm0, %v165_v54 }
 0x148   :  { %v172_v56 = vld [vmem:[#allocation9] sm:$0x1] }
 0x149   :  { %v174_v58 = vmul.f32 %v173_v55, %v172_v56 }
 0x14b   :  { %v177_v59 = vadd.f32 %v176_v57, %v174_v58 }
 0x14d   :  { %178 = vst.msk [vmem:[#allocation9] sm:$0x1] %vm45_vm0, %v177_v59 }
 0x14e   :  { %264 = shalt.err (!%p261_p0)
}
 0x14f   :  { %188 = dma.vmem_to_hbm [thread:$0]  %s186_s25, 16, %s326_s3, [#allocation6]  }
 0x150   :  { %279 = dma.done.wait [#allocation6], 16  }
 0x151   :  { %280 = vsyncadd [#allocation6], 4294967280 }
 0x152   :  { %192 = vsyncpa [#allocation5], 1 }
 0x153   :  { %193 = vsyncpa [#allocation8], 1 }
 0x154   :  { %194 = vsyncpa [#allocation6], 1 }

</bundles_post_ra>
